<compile_context>
chip_gen: v7x
topology: tpu7x:2x2x1
jax: 0.10.0
libtpu: 0.0.40
codegen_flags: <defaults>
</compile_context>

<pallas_src>
from functools import partial

import jax
import jax.numpy as jnp
from jax.experimental import pallas as pl
from jax.experimental.pallas import tpu as pltpu


_VALUE_BYTES = 128 * 1024   # cap on any in-kernel materialized broadcast chunk (vregs)
_MAX_CHUNKS = 32            # cap on unrolled accumulate chunks per grid step


def _budgets():
    """(per-buffer streaming budget, scoped vmem limit) gated on VMEM capacity."""
    vmem_bytes = None
    try:
        vmem_bytes = getattr(pltpu.get_tpu_info(), "vmem_capacity_bytes", None)
    except Exception:
        vmem_bytes = None
    if vmem_bytes is not None and vmem_bytes >= 96 * 1024 * 1024:
        return 8 * 1024 * 1024, 64 * 1024 * 1024      # v5e / v6e: 128 MiB physical VMEM
    return 5 * 1024 * 1024, 32 * 1024 * 1024          # v7x (64 MiB) or unknown: stay safe


def _choose_row_tile(r):
    """Rows (= N*C_in) per Phase-A block: ~half (>=2 parallel blocks), 8-aligned."""
    if r <= 8:
        return r
    return min(8 * pl.cdiv(pl.cdiv(r, 2), 8), 512)


def _choose_co_tile(c):
    """C_out per Phase-B block: full extent if small, else a 128-multiple (>=2 blocks)."""
    if c <= 128:
        return c
    return min(128 * pl.cdiv(pl.cdiv(c, 2), 128), 256)


def _phase_a_tiles(hw, tile_r, itemsize, budget):
    """-> (acc_lanes, n_chunks, tile_hw, nt); tile_hw never exceeds hw."""
    if hw <= 512:
        return hw, 1, hw, 1                           # single full-extent tile, no masking
    acc_lanes = 512
    budget_chunks = max(1, (budget // max(1, tile_r * itemsize)) // acc_lanes)
    n_chunks = max(1, min(hw // acc_lanes, budget_chunks, _MAX_CHUNKS))
    tile_hw = n_chunks * acc_lanes
    return acc_lanes, n_chunks, tile_hw, pl.cdiv(hw, tile_hw)


def _phase_b_tile_hw(hw, rows, itemsize, budget):
    """Lane tile for the broadcast store: full extent if it fits, else budget-sized."""
    cap = max(128, (budget // max(1, rows * itemsize)) // 128 * 128)
    return hw if hw <= cap else cap


# --------------------------------------------------------------------------- #
# Phase A: pooled_sum[r] = sum_hw x[r, hw]  (streamed over HW tiles).
# --------------------------------------------------------------------------- #
def _pool_sum_kernel(x_ref, sum_ref, acc_ref, *, hw, acc_lanes, n_chunks, last_base):
    t = pl.program_id(1)
    nt = pl.num_programs(1)

    @pl.when(t == 0)
    def _init():
        acc_ref[...] = jnp.zeros_like(acc_ref)

    @pl.when(t != nt - 1)
    def _body():                                      # interior tiles: pure chunked adds
        for k in range(n_chunks):
            acc_ref[...] += x_ref[:, k * acc_lanes:(k + 1) * acc_lanes].astype(jnp.float32)

    @pl.when(t == nt - 1)
    def _tail():                                      # last tile: static ragged handling
        for k in range(n_chunks):
            off = last_base + k * acc_lanes
            if off >= hw:                             # chunk fully past the end -> skip
                continue
            xk = x_ref[:, k * acc_lanes:(k + 1) * acc_lanes].astype(jnp.float32)
            if off + acc_lanes <= hw:                 # chunk fully valid -> plain add
                acc_ref[...] += xk
            else:                                     # boundary chunk -> mask padded lanes
                lane = jax.lax.broadcasted_iota(jnp.int32, xk.shape, 1)
                acc_ref[...] += jnp.where(lane < (hw - off), xk, 0.0)
        sum_ref[...] = jnp.sum(acc_ref[...], axis=-1, keepdims=True)


# --------------------------------------------------------------------------- #
# Phase B: fused head (folded 1x1 conv + BN shift + ReLU) and broadcast store.
# --------------------------------------------------------------------------- #
def _head_bcast_kernel(p_ref, w_ref, b_ref, o_ref, y_sc, *, store_lanes):
    n, tile_co, tile_hw = o_ref.shape

    @pl.when(pl.program_id(1) == 0)                   # once per channel block
    def _head():
        z = jnp.dot(p_ref[...], w_ref[...], preferred_element_type=jnp.float32)
        y_sc[...] = jnp.maximum(z + b_ref[...], 0.0)[:, :, None]

    # Pure lane broadcast of the resident (N, tile_co, 1) result; chunked so each
    # materialized value stays vreg-friendly.
    blk = jnp.broadcast_to(y_sc[...], (n, tile_co, store_lanes)).astype(o_ref.dtype)
    for start in range(0, tile_hw, store_lanes):
        width = min(store_lanes, tile_hw - start)
        o_ref[:, :, start:start + width] = blk[:, :, :width]


def image_pool_forward(x, weight, gamma, beta, running_mean, running_var, eps=1e-5,
                       *, buf_bytes=None, vmem_limit_bytes=None):
    """x: [N, C_in, H, W] NCHW; weight: [C_out, C_in, 1, 1] (PyTorch conv layout)."""
    N, C_in, H, W = x.shape
    C_out = weight.shape[0]
    HW = H * W
    R = N * C_in

    auto_buf, auto_limit = _budgets()
    buf_bytes = auto_buf if buf_bytes is None else buf_bytes
    vmem_limit_bytes = auto_limit if vmem_limit_bytes is None else vmem_limit_bytes

    # Fold BN (eval mode, running stats) and the 1/(H*W) of the mean into the weight.
    scale = gamma / jnp.sqrt(running_var + eps)                     # [C_out]
    shift = (beta - running_mean * scale).reshape(1, C_out).astype(jnp.float32)
    wT_folded = (weight.reshape(C_out, C_in).T.astype(jnp.float32)
                 * (scale[None, :].astype(jnp.float32) / float(HW)))  # [C_in, C_out]

    itemsize = jnp.dtype(x.dtype).itemsize

    # ---------------- Phase A: streamed spatial-sum reduction -------------------- #
    x2 = x.reshape(R, HW)
    tile_r = _choose_row_tile(R)
    acc_lanes, n_chunks, tile_hw, nt = _phase_a_tiles(HW, tile_r, itemsize, buf_bytes)
    nr = pl.cdiv(R, tile_r)

    pooled_flat = pl.pallas_call(
        partial(_pool_sum_kernel, hw=HW, acc_lanes=acc_lanes, n_chunks=n_chunks,
                last_base=(nt - 1) * tile_hw),
        out_shape=jax.ShapeDtypeStruct((R, 1), jnp.float32),
        grid=(nr, nt),
        in_specs=[pl.BlockSpec((tile_r, tile_hw), lambda r, t: (r, t))],
        out_specs=pl.BlockSpec((tile_r, 1), lambda r, t: (r, 0)),
        scratch_shapes=[pltpu.VMEM((tile_r, acc_lanes), jnp.float32)],
        compiler_params=pltpu.CompilerParams(
            dimension_semantics=("parallel", "arbitrary"),
            vmem_limit_bytes=vmem_limit_bytes),
    )(x2)
    pooled = pooled_flat.reshape(N, C_in)

    # -------- Phase B: fused head + lane-dense broadcast of y over H*W ----------- #
    tile_co = _choose_co_tile(C_out)
    tile_hw_b = _phase_b_tile_hw(HW, N * tile_co, itemsize, buf_bytes)
    nco = pl.cdiv(C_out, tile_co)
    ntb = pl.cdiv(HW, tile_hw_b)
    store_lanes = max(128, (_VALUE_BYTES // max(1, N * tile_co * itemsize)) // 128 * 128)
    store_lanes = min(store_lanes, tile_hw_b)

    out = pl.pallas_call(
        partial(_head_bcast_kernel, store_lanes=store_lanes),
        out_shape=jax.ShapeDtypeStruct((N, C_out, HW), x.dtype),
        grid=(nco, ntb),
        in_specs=[pl.BlockSpec((N, C_in), lambda c, t: (0, 0)),
                  pl.BlockSpec((C_in, tile_co), lambda c, t: (0, c)),
                  pl.BlockSpec((1, tile_co), lambda c, t: (0, c))],
        out_specs=pl.BlockSpec((N, tile_co, tile_hw_b), lambda c, t: (0, c, t)),
        scratch_shapes=[pltpu.VMEM((N, tile_co, 1), jnp.float32)],
        compiler_params=pltpu.CompilerParams(
            dimension_semantics=("parallel", "arbitrary"),
            vmem_limit_bytes=vmem_limit_bytes),
    )(pooled, wT_folded, shift)

    return out.reshape(N, C_out, H, W)


def _reference_forward(x, weight, gamma, beta, running_mean, running_var, eps=1e-5):
    """Pure-JAX reference mirroring the PyTorch module in eval mode."""
    N, C_in, H, W = x.shape
    C_out = weight.shape[0]
    pooled = jnp.mean(x, axis=(2, 3))                            # [N, C_in]
    z = pooled @ weight.reshape(C_out, C_in).T                   # [N, C_out]
    z = (z - running_mean) / jnp.sqrt(running_var + eps) * gamma + beta
    z = jnp.maximum(z, 0.0)
    return jnp.broadcast_to(z[:, :, None, None], (N, C_out, H, W))


def _make_params(key, C_in, C_out):
    k_w, k_g, k_b, k_m, k_v = jax.random.split(key, 5)
    weight = jax.random.normal(k_w, (C_out, C_in, 1, 1), dtype=jnp.float32) * 0.5
    gamma = 1.0 + 0.1 * jax.random.normal(k_g, (C_out,), dtype=jnp.float32)
    beta = 0.1 * jax.random.normal(k_b, (C_out,), dtype=jnp.float32)
    running_mean = 0.1 * jax.random.normal(k_m, (C_out,), dtype=jnp.float32)
    running_var = 1.0 + 0.1 * jax.random.uniform(k_v, (C_out,), dtype=jnp.float32)
    return weight, gamma, beta, running_mean, running_var


def _check(key, N, C_in, C_out, H, W, **fwd_kwargs):
    k_x, k_p = jax.random.split(key)
    x = jax.random.normal(k_x, (N, C_in, H, W), dtype=jnp.float32)
    params = _make_params(k_p, C_in, C_out)
    out = jax.block_until_ready(image_pool_forward(x, *params, **fwd_kwargs))
    ref = _reference_forward(x, *params)
    assert out.shape == (N, C_out, H, W)
    assert jnp.allclose(out, ref, atol=1e-5, rtol=1e-5), (
        f"mismatch vs reference for shape {(N, C_in, C_out, H, W)}")


if __name__ == "__main__":
    key = jax.random.PRNGKey(0)
    k0, k1, k2, k3, k4 = jax.random.split(key, 5)

    # Primary small test (typical module usage scale).
    _check(k0, N=2, C_in=4, C_out=8, H=16, W=16)
    # Ragged HW (65*65=4225): multi-chunk fold + masked boundary chunk in the last tile.
    _check(k1, N=1, C_in=8, C_out=8, H=65, W=65)
    # Row tiling with a ragged last row block (N*C_in = 600).
    _check(k2, N=1, C_in=600, C_out=8, H=16, W=16)
    # Tiny forced budget: multi-tile streamed reduction + tiled broadcast stores,
    # exercising last-tile-only masking and per-channel-block head reuse across tiles.
    _check(k3, N=2, C_in=16, C_out=48, H=40, W=40, buf_bytes=64 * 1024)
    # Larger HW with small rows: chunked broadcast stores incl. a partial final chunk.
    _check(k4, N=1, C_in=8, C_out=8, H=129, W=129)

    print("KERNEL_OK")
</pallas_src>

<mosaic_0001>
module attributes {stable_mosaic.version = 11 : i64} {
  func.func @_pool_sum_kernel(%arg0: i32, %arg1: i32, %arg2: memref<8x256xf32, #tpu.memory_space<vmem>>, %arg3: memref<8x1xf32, #tpu.memory_space<vmem>>, %arg4: memref<8x256xf32, #tpu.memory_space<vmem>>) attributes {dimension_semantics = [#tpu.dimension_semantics<parallel>, #tpu.dimension_semantics<arbitrary>], iteration_bounds = array<i64: 1, 1>, scalar_prefetch = 0 : i64, scratch_operands = 1 : i64, tpu.core_type = #tpu.core_type<tc>, window_params = [{transform_indices = @transform_0, window_bounds = array<i64: 8, 256>}, {transform_indices = @transform_1, window_bounds = array<i64: 8, 1>}]} {
    %c0_i32 = arith.constant 0 : i32
    %0 = arith.cmpi eq, %arg1, %c0_i32 : i32
    %1 = arith.extui %0 : i1 to i32
    %c0_i32_0 = arith.constant 0 : i32
    %2 = arith.cmpi ne, %1, %c0_i32_0 : i32
    scf.if %2 {
      %cst = arith.constant 0.000000e+00 : f32
      %9 = vector.broadcast %cst : f32 to vector<8x256xf32>
      %c0 = arith.constant 0 : index
      %c0_5 = arith.constant 0 : index
      %10 = vector.load %arg4[%c0, %c0_5] : memref<8x256xf32, #tpu.memory_space<vmem>>, vector<8x256xf32>
      tpu.vector_store %arg4[%c0, %c0_5], %9 {strides = array<i32>} : memref<8x256xf32, #tpu.memory_space<vmem>>, vector<8x256xf32>,
    } else {
    }
    %c0_i32_1 = arith.constant 0 : i32
    %3 = arith.cmpi ne, %arg1, %c0_i32_1 : i32
    %4 = arith.extui %3 : i1 to i32
    %c0_i32_2 = arith.constant 0 : i32
    %5 = arith.cmpi ne, %4, %c0_i32_2 : i32
    scf.if %5 {
      %c0 = arith.constant 0 : index
      %c0_5 = arith.constant 0 : index
      %9 = vector.load %arg4[%c0, %c0_5] : memref<8x256xf32, #tpu.memory_space<vmem>>, vector<8x256xf32>
      %c0_6 = arith.constant 0 : index
      %c0_7 = arith.constant 0 : index
      %10 = vector.load %arg2[%c0_6, %c0_7] : memref<8x256xf32, #tpu.memory_space<vmem>>, vector<8x256xf32>
      %11 = arith.addf %9, %10 : vector<8x256xf32>
      %c0_8 = arith.constant 0 : index
      %c0_9 = arith.constant 0 : index
      %12 = vector.load %arg4[%c0_8, %c0_9] : memref<8x256xf32, #tpu.memory_space<vmem>>, vector<8x256xf32>
      tpu.vector_store %arg4[%c0_8, %c0_9], %11 {strides = array<i32>} : memref<8x256xf32, #tpu.memory_space<vmem>>, vector<8x256xf32>,
    } else {
    }
    %c0_i32_3 = arith.constant 0 : i32
    %6 = arith.cmpi eq, %arg1, %c0_i32_3 : i32
    %7 = arith.extui %6 : i1 to i32
    %c0_i32_4 = arith.constant 0 : i32
    %8 = arith.cmpi ne, %7, %c0_i32_4 : i32
    scf.if %8 {
      %c0 = arith.constant 0 : index
      %c0_5 = arith.constant 0 : index
      %9 = vector.load %arg2[%c0, %c0_5] : memref<8x256xf32, #tpu.memory_space<vmem>>, vector<8x256xf32>
      %c0_6 = arith.constant 0 : index
      %c0_7 = arith.constant 0 : index
      %10 = vector.load %arg4[%c0_6, %c0_7] : memref<8x256xf32, #tpu.memory_space<vmem>>, vector<8x256xf32>
      %11 = arith.addf %10, %9 : vector<8x256xf32>
      %c0_8 = arith.constant 0 : index
      %c0_9 = arith.constant 0 : index
      %12 = vector.load %arg4[%c0_8, %c0_9] : memref<8x256xf32, #tpu.memory_space<vmem>>, vector<8x256xf32>
      tpu.vector_store %arg4[%c0_8, %c0_9], %11 {strides = array<i32>} : memref<8x256xf32, #tpu.memory_space<vmem>>, vector<8x256xf32>,
      %c0_10 = arith.constant 0 : index
      %c0_11 = arith.constant 0 : index
      %13 = vector.load %arg4[%c0_10, %c0_11] : memref<8x256xf32, #tpu.memory_space<vmem>>, vector<8x256xf32>
      %cst = arith.constant dense<0.000000e+00> : vector<8xf32>
      %14 = vector.multi_reduction <add>, %13, %cst [1] : vector<8x256xf32> to vector<8xf32>
      %15 = vector.shape_cast %14 : vector<8xf32> to vector<8x1xf32>
      %c0_12 = arith.constant 0 : index
      %c0_13 = arith.constant 0 : index
      %16 = vector.load %arg3[%c0_12, %c0_13] : memref<8x1xf32, #tpu.memory_space<vmem>>, vector<8x1xf32>
      tpu.vector_store %arg3[%c0_12, %c0_13], %15 {strides = array<i32>} : memref<8x1xf32, #tpu.memory_space<vmem>>, vector<8x1xf32>,
    } else {
    }
    return
  }
  func.func @transform_0(%arg0: i32, %arg1: i32) -> (i32, i32) {
    %c0_i32 = arith.constant 0 : i32
    return %arg0, %arg1 : i32, i32
  }
  func.func @transform_1(%arg0: i32, %arg1: i32) -> (i32, i32) {
    %c0_i32 = arith.constant 0 : i32
    %c0_i32_0 = arith.constant 0 : i32
    return %arg0, %c0_i32 : i32, i32
  }
}

</mosaic_0001>

<bundles_post_ra>
// kernel: tpu_custom_call.1
= control target key start
LH: loop header
LB: loop body
LE: loop exit
PB: predicated region body
PF: predicated region fallthrough
CT: control target
= control target key end

     0   :  { %6 = vsyncpa [#allocation4], 0  ;;  %s86_s6 = smov [#allocation3]   ;;  %s112_s0 = inlined_call_operand.hbm [shape: f32[8,256], index: 0, kind: input, shape index: {}]   ;;  %s113_s1 = inlined_call_operand.vmem [shape: f32[8,1], index: 1, kind: output, shape index: {}]  }
   0x1   :  { %s13_s7 = sshll.u32 %s86_s6, 4  ;;  %s62_s10 = scalar_lea.hbm %s112_s0, 256  ;;  %s14_s7 = int_to_ptr.vmem [resolvable:$true] %s13_s7 }
   0x2   :  { %p63_p0 = scmp.ne.s32.totalorder %s112_s0, %s62_s10  ;;  %p66_p1 = scmp.lt.u32.totalorder %s62_s10, %s112_s0 }
   0x4   :  { %p68_p2 = pnand %p66_p1, %p63_p0 }
   0x6   :  { %71 = shalt.err (!%p68_p2)
}
   0x7   :  { %s72_s15 = scalar_lea.vmem %s14_s7, 256  ;;  %p77_p4 = scmp.lt.s32.totalorder %s14_s7, %s14_s7 }
   0x8   :  { %p73_p3 = scmp.ne.s32.totalorder %s14_s7, %s72_s15  ;;  %p78_p5 = scmp.lt.s32.totalorder %s72_s15, %s72_s15 }
   0xa   :  { %p79_p6 = por %p78_p5, %p77_p4 }
   0xc   :  { %p80_p7 = pnand %p79_p6, %p73_p3 }
   0xe   :  { %83 = shalt.err (!%p80_p7)
}
   0xf   :  { %16 = dma.hbm_to_vmem [thread:$0]  %s112_s0, 256, %s14_s7, [#allocation4]  }
  0x10   :  { %84 = dma.done.wait [#allocation4], 256  }
  0x11   :  { %85 = vsyncadd [#allocation4], 4294967040  ;;  %v41_v0 = vld [vmem:[#allocation3] sm:$0xff]  ;;  %v42_v1 = vld [vmem:[#allocation3 + $0x8] sm:$0xff]  ;;  %vm54_vm0 = vcmask 7168  }
  0x12   :  { %v51_v2 = vadd.f32 %v42_v1, %v41_v0 }
  0x14   :  { %52 = vadd.xlane.f32.xlu0 %v51_v2 }
  0xa1   :  { %v53_v3 = vpop.xlane.xlu0 %52 }
  0xa2   :  { %55 = vst.msk [vmem:[%s113_s1] sm:$0xff] %vm54_vm0, %v53_v3 }
  0xa3   :  { %60 = vsyncpa [#allocation4], 1 }

</bundles_post_ra>
